<compile_context>
chip_gen: v6e
topology: v6e:2x2x1
jax: 0.10.0
libtpu: 0.0.40
codegen_flags: <defaults>
</compile_context>

<pallas_src>
import math

import jax
import jax.numpy as jnp
from jax.experimental import pallas as pl
from jax.experimental.pallas import tpu as pltpu


def _round_up(x, m):
    return (x + m - 1) // m * m


# ----------------------------- Pallas kernel -------------------------------

def _edge_features_kernel(x_ref, ef_ref, w1_ref, b1_ref, w2_ref, b2_ref, out_ref):
    """Fused per-edge-tile math:
       x_ref  : (TE, 2*C_in)   bf16   = [nsum | ef]
       ef_ref : (TE, C_in)     f32    (residual)
       w1_ref : (2*C_in, 2*C_hid) bf16 block-diag [[W1a,0],[0,W1b]]
       b1_ref : (1, 2*C_hid)   f32    [b1a | b1b]
       w2_ref : (2*C_hid, C_out) bf16 [W2a ; W2b]
       b2_ref : (1, C_out)     f32    b2a + b2b
    """
    # Layer 1 of BOTH MLPs as one MXU matmul (K = 2*C_in, N = 2*C_hid).
    h = jnp.dot(x_ref[...], w1_ref[...],
                preferred_element_type=jnp.float32) + b1_ref[...]
    h = jnp.maximum(h, 0.0).astype(jnp.bfloat16)          # [relu(h1) | relu(h2)]

    # Layer 2 of BOTH MLPs as one MXU matmul (K = 2*C_hid = 128, MXU-native).
    z = jnp.dot(h, w2_ref[...],
                preferred_element_type=jnp.float32) + b2_ref[...]

    # nn.InstanceNorm1d over each edge's (1, C_out) vector: biased var, eps=1e-5.
    mean = jnp.mean(z, axis=-1, keepdims=True)
    var = jnp.mean((z - mean) ** 2, axis=-1, keepdims=True)
    zn = (z - mean) * jax.lax.rsqrt(var + 1e-5)

    # TODO(synk): nn.Dropout(p=0.1) is created in training mode inside forward();
    # implemented here as identity (eval semantics).
    out_ref[...] = ef_ref[...] + jnp.maximum(zn, 0.0)


# ------------------------------- wrapper ------------------------------------

def edge_features_forward(node_features, edge_index, edge_features, params,
                          *, tile_e=512):
    """Gathers node rows per edge (XLA glue), fuses the paired MLP weights, and
    runs the fused Pallas kernel over large edge tiles."""
    (w1a, b1a, w2a, b2a), (w1b, b1b, w2b, b2b) = params

    _, n_nodes, c_in = node_features.shape
    e = edge_index.shape[-1]
    c_hid = w1a.shape[1]
    c_out = w2a.shape[1]
    assert c_out == c_in, "residual add requires c_in == c_out2 (as in the PyTorch code)"

    # ---- fused parameters (built once per call; tiny) ----
    w1_blk = jnp.zeros((2 * c_in, 2 * c_hid), jnp.float32)
    w1_blk = w1_blk.at[:c_in, :c_hid].set(w1a).at[c_in:, c_hid:].set(w1b)
    w1_blk = w1_blk.astype(jnp.bfloat16)                      # (2*C_in, 2*C_hid)
    b1_cat = jnp.concatenate([b1a, b1b], axis=-1)             # (1, 2*C_hid) f32
    w2_cat = jnp.concatenate([w2a, w2b], axis=0).astype(jnp.bfloat16)  # (2*C_hid, C_out)
    b2_sum = b2a + b2b                                        # (1, C_out) f32

    # ---- per-edge inputs ----
    src = edge_index[0, 0, :]
    dst = edge_index[0, 1, :]
    nsum = node_features[0, src, :] + node_features[0, dst, :]   # (E, C_in)
    ef2d = edge_features[0]                                      # (E, C_in) f32
    x_cat = jnp.concatenate([nsum, ef2d], axis=-1).astype(jnp.bfloat16)  # (E, 2*C_in)

    # ---- pad E and pick the tile: big tiles amortize per-step overhead,
    #      but keep >1 grid step for large E so v7x can use both TensorCores ----
    e_pad = _round_up(e, 8)
    tile = _round_up(min(tile_e, e_pad), 8)
    e_pad = _round_up(e, tile)
    if e_pad != e:
        x_cat = jnp.pad(x_cat, ((0, e_pad - e), (0, 0)))
        ef_in = jnp.pad(ef2d, ((0, e_pad - e), (0, 0)))
    else:
        ef_in = ef2d

    full = lambda shape: pl.BlockSpec(shape, lambda i: (0, 0))

    out2d = pl.pallas_call(
        _edge_features_kernel,
        out_shape=jax.ShapeDtypeStruct((e_pad, c_out), jnp.float32),
        grid=(e_pad // tile,),
        in_specs=[
            pl.BlockSpec((tile, 2 * c_in), lambda i: (i, 0)),   # [nsum | ef] (bf16)
            pl.BlockSpec((tile, c_in), lambda i: (i, 0)),       # ef residual (f32)
            full((2 * c_in, 2 * c_hid)),                        # block-diag W1
            full((1, 2 * c_hid)),                               # [b1a | b1b]
            full((2 * c_hid, c_out)),                           # [W2a ; W2b]
            full((1, c_out)),                                   # b2a + b2b
        ],
        out_specs=pl.BlockSpec((tile, c_out), lambda i: (i, 0)),
        compiler_params=pltpu.CompilerParams(
            dimension_semantics=("parallel",)),
    )(x_cat, ef_in, w1_blk, b1_cat, w2_cat, b2_sum)

    return out2d[:e][None]          # (1, E, C_out), same layout as edge_features


# ------------------------- deterministic parameters -------------------------

def init_fcnn_params(key, c_in, c_hid, c_out):
    """PyTorch-Linear-style uniform init; weights stored as (in, out) for x @ W."""
    k1, k2, k3, k4 = jax.random.split(key, 4)
    lim1 = 1.0 / math.sqrt(c_in)
    lim2 = 1.0 / math.sqrt(c_hid)
    w1 = jax.random.uniform(k1, (c_in, c_hid), jnp.float32, -lim1, lim1)
    b1 = jax.random.uniform(k2, (1, c_hid), jnp.float32, -lim1, lim1)
    w2 = jax.random.uniform(k3, (c_hid, c_out), jnp.float32, -lim2, lim2)
    b2 = jax.random.uniform(k4, (1, c_out), jnp.float32, -lim2, lim2)
    return w1, b1, w2, b2


def reference_forward(node_features, edge_index, edge_features, params):
    """Pure-JAX f32 reference of the per-edge math (dropout = identity)."""
    (w1a, b1a, w2a, b2a), (w1b, b1b, w2b, b2b) = params
    src = edge_index[0, 0, :]
    dst = edge_index[0, 1, :]
    nsum = node_features[0, src, :] + node_features[0, dst, :]
    ef = edge_features[0]
    h1 = jnp.maximum(nsum @ w1a + b1a, 0.0) @ w2a + b2a
    h2 = jnp.maximum(ef @ w1b + b1b, 0.0) @ w2b + b2b
    z = h1 + h2
    mean = jnp.mean(z, axis=-1, keepdims=True)
    var = jnp.mean((z - mean) ** 2, axis=-1, keepdims=True)
    zn = (z - mean) / jnp.sqrt(var + 1e-5)
    return (ef + jnp.maximum(zn, 0.0))[None]


# ---------------------------------- main -------------------------------------

if __name__ == "__main__":
    C_IN, C_HID, C_OUT = 32, 64, 32      # c_in1, c_out1, c_out2  (c_out2 == c_in1)
    N_NODES, N_EDGES = 12, 16

    key = jax.random.PRNGKey(0)
    k_nf, k_ef, k_ei, k_p1, k_p2 = jax.random.split(key, 5)

    node_features = jax.random.normal(k_nf, (1, N_NODES, C_IN), jnp.float32)
    edge_features = jax.random.normal(k_ef, (1, N_EDGES, C_IN), jnp.float32)
    edge_index = jax.random.randint(k_ei, (1, 2, N_EDGES), 0, N_NODES, jnp.int32)

    params = (init_fcnn_params(k_p1, C_IN, C_HID, C_OUT),   # FCNN_one
              init_fcnn_params(k_p2, C_IN, C_HID, C_OUT))   # FCNN_two

    out = edge_features_forward(node_features, edge_index, edge_features, params)
    out = jax.block_until_ready(out)

    ref = reference_forward(node_features, edge_index, edge_features, params)
    assert out.shape == edge_features.shape
    # bf16 matmul operands (f32 accumulation) -> slightly looser tolerance vs f32 ref.
    assert jnp.allclose(out, ref, rtol=3e-2, atol=3e-2), \
        f"max abs diff {jnp.max(jnp.abs(out - ref))}"

    print("KERNEL_OK")
</pallas_src>

<mosaic_0001>
module attributes {stable_mosaic.version = 11 : i64} {
  func.func @_edge_features_kernel(%arg0: i32, %arg1: memref<16x64xbf16, #tpu.memory_space<vmem>>, %arg2: memref<16x32xf32, #tpu.memory_space<vmem>>, %arg3: memref<64x128xbf16, #tpu.memory_space<vmem>>, %arg4: memref<1x128xf32, #tpu.memory_space<vmem>>, %arg5: memref<128x32xbf16, #tpu.memory_space<vmem>>, %arg6: memref<1x32xf32, #tpu.memory_space<vmem>>, %arg7: memref<16x32xf32, #tpu.memory_space<vmem>>) attributes {dimension_semantics = [#tpu.dimension_semantics<parallel>], iteration_bounds = array<i64: 1>, scalar_prefetch = 0 : i64, scratch_operands = 0 : i64, tpu.core_type = #tpu.core_type<tc>, window_params = [{transform_indices = @transform_0, window_bounds = array<i64: 16, 64>}, {transform_indices = @transform_1, window_bounds = array<i64: 16, 32>}, {pipeline_mode = #tpu.pipeline_mode<synchronous>, transform_indices = @transform_2, window_bounds = array<i64: 64, 128>}, {pipeline_mode = #tpu.pipeline_mode<synchronous>, transform_indices = @transform_3, window_bounds = array<i64: 1, 128>}, {pipeline_mode = #tpu.pipeline_mode<synchronous>, transform_indices = @transform_4, window_bounds = array<i64: 128, 32>}, {pipeline_mode = #tpu.pipeline_mode<synchronous>, transform_indices = @transform_5, window_bounds = array<i64: 1, 32>}, {transform_indices = @transform_6, window_bounds = array<i64: 16, 32>}]} {
    %c0 = arith.constant 0 : index
    %c0_0 = arith.constant 0 : index
    %0 = vector.load %arg1[%c0, %c0_0] : memref<16x64xbf16, #tpu.memory_space<vmem>>, vector<16x64xbf16>
    %c0_1 = arith.constant 0 : index
    %c0_2 = arith.constant 0 : index
    %1 = vector.load %arg3[%c0_1, %c0_2] : memref<64x128xbf16, #tpu.memory_space<vmem>>, vector<64x128xbf16>
    %cst = arith.constant dense<0.000000e+00> : vector<16x128xf32>
    %2 = tpu.matmul %0, %1, %cst {dimension_numbers = #tpu.dot_dimension_numbers<[1], [0], [0], [1], [0, 0, 1, 1], [], []>} : vector<16x64xbf16>, vector<64x128xbf16>, vector<16x128xf32> -> vector<16x128xf32>
    %c0_3 = arith.constant 0 : index
    %c0_4 = arith.constant 0 : index
    %3 = vector.load %arg4[%c0_3, %c0_4] : memref<1x128xf32, #tpu.memory_space<vmem>>, vector<1x128xf32>
    %4 = vector.broadcast %3 : vector<1x128xf32> to vector<16x128xf32>
    %5 = arith.addf %2, %4 : vector<16x128xf32>
    %cst_5 = arith.constant 0.000000e+00 : f32
    %6 = vector.broadcast %cst_5 : f32 to vector<16x128xf32>
    %7 = arith.maximumf %5, %6 : vector<16x128xf32>
    %8 = arith.truncf %7 : vector<16x128xf32> to vector<16x128xbf16>
    %c0_6 = arith.constant 0 : index
    %c0_7 = arith.constant 0 : index
    %9 = vector.load %arg5[%c0_6, %c0_7] : memref<128x32xbf16, #tpu.memory_space<vmem>>, vector<128x32xbf16>
    %cst_8 = arith.constant dense<0.000000e+00> : vector<16x32xf32>
    %10 = tpu.matmul %8, %9, %cst_8 {dimension_numbers = #tpu.dot_dimension_numbers<[1], [0], [0], [1], [0, 0, 1, 1], [], []>} : vector<16x128xbf16>, vector<128x32xbf16>, vector<16x32xf32> -> vector<16x32xf32>
    %c0_9 = arith.constant 0 : index
    %c0_10 = arith.constant 0 : index
    %11 = vector.load %arg6[%c0_9, %c0_10] : memref<1x32xf32, #tpu.memory_space<vmem>>, vector<1x32xf32>
    %12 = vector.broadcast %11 : vector<1x32xf32> to vector<16x32xf32>
    %13 = arith.addf %10, %12 : vector<16x32xf32>
    %cst_11 = arith.constant dense<0.000000e+00> : vector<16xf32>
    %14 = vector.multi_reduction <add>, %13, %cst_11 [1] : vector<16x32xf32> to vector<16xf32>
    %15 = vector.shape_cast %14 : vector<16xf32> to vector<16x1xf32>
    %cst_12 = arith.constant 3.200000e+01 : f32
    %16 = vector.broadcast %cst_12 : f32 to vector<16x1xf32>
    %17 = arith.divf %15, %16 : vector<16x1xf32>
    %18 = vector.broadcast %17 : vector<16x1xf32> to vector<16x32xf32>
    %19 = arith.subf %13, %18 : vector<16x32xf32>
    %20 = arith.mulf %19, %19 : vector<16x32xf32>
    %cst_13 = arith.constant dense<0.000000e+00> : vector<16xf32>
    %21 = vector.multi_reduction <add>, %20, %cst_13 [1] : vector<16x32xf32> to vector<16xf32>
    %22 = vector.shape_cast %21 : vector<16xf32> to vector<16x1xf32>
    %cst_14 = arith.constant 3.200000e+01 : f32
    %23 = vector.broadcast %cst_14 : f32 to vector<16x1xf32>
    %24 = arith.divf %22, %23 : vector<16x1xf32>
    %25 = vector.broadcast %17 : vector<16x1xf32> to vector<16x32xf32>
    %26 = arith.subf %13, %25 : vector<16x32xf32>
    %cst_15 = arith.constant 9.99999974E-6 : f32
    %27 = vector.broadcast %cst_15 : f32 to vector<16x1xf32>
    %28 = arith.addf %24, %27 : vector<16x1xf32>
    %29 = math.rsqrt %28 : vector<16x1xf32>
    %30 = vector.broadcast %29 : vector<16x1xf32> to vector<16x32xf32>
    %31 = arith.mulf %26, %30 : vector<16x32xf32>
    %c0_16 = arith.constant 0 : index
    %c0_17 = arith.constant 0 : index
    %32 = vector.load %arg2[%c0_16, %c0_17] : memref<16x32xf32, #tpu.memory_space<vmem>>, vector<16x32xf32>
    %cst_18 = arith.constant 0.000000e+00 : f32
    %33 = vector.broadcast %cst_18 : f32 to vector<16x32xf32>
    %34 = arith.maximumf %31, %33 : vector<16x32xf32>
    %35 = arith.addf %32, %34 : vector<16x32xf32>
    %c0_19 = arith.constant 0 : index
    %c0_20 = arith.constant 0 : index
    %36 = vector.load %arg7[%c0_19, %c0_20] : memref<16x32xf32, #tpu.memory_space<vmem>>, vector<16x32xf32>
    tpu.vector_store %arg7[%c0_19, %c0_20], %35 {strides = array<i32>} : memref<16x32xf32, #tpu.memory_space<vmem>>, vector<16x32xf32>,
    return
  }
  func.func @transform_0(%arg0: i32) -> (i32, i32) {
    %c0_i32 = arith.constant 0 : i32
    %c0_i32_0 = arith.constant 0 : i32
    return %arg0, %c0_i32 : i32, i32
  }
  func.func @transform_1(%arg0: i32) -> (i32, i32) {
    %c0_i32 = arith.constant 0 : i32
    %c0_i32_0 = arith.constant 0 : i32
    return %arg0, %c0_i32 : i32, i32
  }
  func.func @transform_2(%arg0: i32) -> (i32, i32) {
    %c0_i32 = arith.constant 0 : i32
    %c0_i32_0 = arith.constant 0 : i32
    %c0_i32_1 = arith.constant 0 : i32
    return %c0_i32, %c0_i32_0 : i32, i32
  }
  func.func @transform_3(%arg0: i32) -> (i32, i32) {
    %c0_i32 = arith.constant 0 : i32
    %c0_i32_0 = arith.constant 0 : i32
    %c0_i32_1 = arith.constant 0 : i32
    return %c0_i32, %c0_i32_0 : i32, i32
  }
  func.func @transform_4(%arg0: i32) -> (i32, i32) {
    %c0_i32 = arith.constant 0 : i32
    %c0_i32_0 = arith.constant 0 : i32
    %c0_i32_1 = arith.constant 0 : i32
    return %c0_i32, %c0_i32_0 : i32, i32
  }
  func.func @transform_5(%arg0: i32) -> (i32, i32) {
    %c0_i32 = arith.constant 0 : i32
    %c0_i32_0 = arith.constant 0 : i32
    %c0_i32_1 = arith.constant 0 : i32
    return %c0_i32, %c0_i32_0 : i32, i32
  }
  func.func @transform_6(%arg0: i32) -> (i32, i32) {
    %c0_i32 = arith.constant 0 : i32
    %c0_i32_0 = arith.constant 0 : i32
    return %arg0, %c0_i32 : i32, i32
  }
}

</mosaic_0001>

<bundles_post_ra>
// kernel: tpu_custom_call.1
= control target key start
LH: loop header
LB: loop body
LE: loop exit
PB: predicated region body
PF: predicated region fallthrough
CT: control target
= control target key end

     0   :  { %v389_v1 = vmov 0.0   ;;  %vm390_vm0 = vmmov 0   ;;  %s489_s0 = inlined_call_operand.vmem [shape: bf16[16,64], index: 0, kind: input, shape index: {}]   ;;  %s490_s1 = inlined_call_operand.vmem [shape: f32[16,32], index: 1, kind: input, shape index: {}]   ;;  %s491_s2 = inlined_call_operand.vmem [shape: bf16[64,128], index: 2, kind: input, shape index: {}]   ;;  %s492_s3 = inlined_call_operand.vmem [shape: f32[1,128], index: 3, kind: input, shape index: {}]   ;;  %s493_s4 = inlined_call_operand.vmem [shape: bf16[128,32], index: 4, kind: input, shape index: {}]   ;;  %s494_s5 = inlined_call_operand.vmem [shape: f32[1,32], index: 5, kind: input, shape index: {}]   ;;  %s495_s6 = inlined_call_operand.hbm [shape: f32[16,32], index: 6, kind: output, shape index: {}]  }
   0x1   :  { %v350_v0 = vld [vmem:[%s491_s2 + $0x18] sm:$0xff]   ;;  %313 = vmatprep.subr.bf16.mxu0 %v389_v1  ;;  %325 = vmatprep.subr.bf16.mxu1 %v389_v1  ;;  %v351_v2 = vld [vmem:[%s491_s2 + $0x10] sm:$0xff]   ;;  %v352_v4 = vld [vmem:[%s491_s2 + $0x8] sm:$0xff]  }
   0x2   :  { %314 = vmatpush3.bf16.msra.mxu0 %v350_v0  ;;  %321 = vmatprep.mubr.msk.bf16.mxu0 %vm390_vm0, %v389_v1  ;;  %v355_v3 = vld [vmem:[%s493_s4 + $0x38] sm:$0xff]   ;;  %v356_v5 = vld [vmem:[%s493_s4 + $0x30] sm:$0xff]   ;;  %v353_v6 = vld [vmem:[%s491_s2] sm:$0xff]  }
   0x3   :  { %315 = vmatprep.subr.bf16.mxu0 %v389_v1  ;;  %341 = vmatprep.mubr.msk.bf16.mxu1 %vm390_vm0, %v389_v1  ;;  %v357_v7 = vld [vmem:[%s493_s4 + $0x28] sm:$0xff]  }
   0x4   :  { %326 = vmatpush3.bf16.msra.mxu1 %v355_v3 }
   0x5   :  { %327 = vmatprep.subr.bf16.mxu1 %v389_v1 }
   0x6   :  { %316 = vmatpush3.bf16.msra.mxu0 %v351_v2 }
   0x7   :  { %317 = vmatprep.subr.bf16.mxu0 %v389_v1 }
   0x8   :  { %328 = vmatpush3.bf16.msra.mxu1 %v356_v5 }
   0x9   :  { %329 = vmatprep.subr.bf16.mxu1 %v389_v1 }
   0xa   :  { %318 = vmatpush3.bf16.msra.mxu0 %v352_v4 }
   0xb   :  { %319 = vmatprep.subr.bf16.mxu0 %v389_v1 }
   0xc   :  { %11 = vsyncpa [#allocation3], 0  ;;  %v354_v8 = vld [vmem:[%s489_s0] sm:$0xff]   ;;  %vm71_vm1 = vcmask 523264   ;;  %330 = vmatpush3.bf16.msra.mxu1 %v357_v7  ;;  %v359_v10 = vld [vmem:[%s493_s4 + $0x18] sm:$0xff]   ;;  %vm231_vm2 = vcmask 261120  }
   0xd   :  { %v358_v9 = vld [vmem:[%s493_s4 + $0x20] sm:$0xff]   ;;  %331 = vmatprep.subr.bf16.mxu1 %v389_v1  ;;  %v360_v11 = vld [vmem:[%s493_s4 + $0x10] sm:$0xff]   ;;  %v361_v12 = vld [vmem:[%s493_s4 + $0x8] sm:$0xff]  }
   0xe   :  { %320 = vmatpush3.bf16.msra.mxu0 %v353_v6  ;;  %v362_v13 = vld [vmem:[%s493_s4] sm:$0xff]   ;;  %v260_v56 = vld [vmem:[%s490_s1 + $0x8] sm:$0xff] }
   0xf   :  { %v283_v14 = vld [vmem:[%s492_s3] ss:$0 sm:$0xff] }
  0x10   :  { %332 = vmatpush3.bf16.msra.mxu1 %v358_v9  ;;  %v290_v24 = vld [vmem:[%s494_s5] ss:$0 sm:$0xff]  ;;  %s391_s5 = smov [#allocation2]  }
  0x11   :  { %322 = vmatmul.mubr.msk.bf16.vlgmr.msra.gmra.mxu0 %vm71_vm1, %v354_v8  ;;  %333 = vmatprep.subr.bf16.mxu1 %v389_v1  ;;  %v259_v51 = vld [vmem:[%s490_s1] sm:$0xff]  ;;  %s272_s25 = sshll.u32 %s391_s5, 4  ;;  %s273_s25 = int_to_ptr.vmem [resolvable:$true] %s272_s25 }
  0x12   :  { %s367_s28 = scalar_lea.vmem %s273_s25, 256  ;;  %p372_p1 = scmp.lt.s32.totalorder %s273_s25, %s273_s25 }
  0x13   :  { %p368_p0 = scmp.ne.s32.totalorder %s273_s25, %s367_s28  ;;  %p373_p2 = scmp.lt.s32.totalorder %s367_s28, %s367_s28 }
  0x14   :  { %334 = vmatpush3.bf16.msra.mxu1 %v359_v10 }
  0x15   :  { %335 = vmatprep.subr.bf16.mxu1 %v389_v1  ;;  %p374_p3 = por %p373_p2, %p372_p1 }
  0x17   :  { %p375_p4 = pnand %p374_p3, %p368_p0 }
  0x18   :  { %336 = vmatpush3.bf16.msra.mxu1 %v360_v11 }
  0x19   :  { %337 = vmatprep.subr.bf16.mxu1 %v389_v1 }
  0x1c   :  { %338 = vmatpush3.bf16.msra.mxu1 %v361_v12 }
  0x1d   :  { %339 = vmatprep.subr.bf16.mxu1 %v389_v1 }
  0x20   :  { %340 = vmatpush3.bf16.msra.mxu1 %v362_v13 }
  0xd1   :  { %v109_v15 = vpop.f32.mrf.mxu0 }
  0xd2   :  { %v110_v17 = vadd.f32 %v283_v14, %v109_v15 }
  0xd3   :  { %v323_v16 = vpop.f32.mrf.mxu0 }
  0xd4   :  { %v116_v21 = vmax.f32 %v110_v17, 0.0 }
  0xd5   :  { %v112_v18 = vpop.f32.mrf.mxu0 }
  0xd6   :  { %v113_v19 = vadd.f32 %v283_v14, %v112_v18 }
  0xd7   :  { %v324_v20 = vpop.f32.mrf.mxu0 }
  0xd8   :  { %v117_v22 = vmax.f32 %v113_v19, 0.0 }
  0xda   :  { %v118_v23 = vpack.c.bf16 %v117_v22, %v116_v21 }
  0xdc   :  { %342 = vmatmul.mubr.bf16.vlgmr.msra.gmra.mxu1 %v118_v23 }
 0x19c   :  { %v224_v25 = vpop.f32.mrf.mxu1 }
 0x19d   :  { %v225_v26 = vadd.f32 %v290_v24, %v224_v25 }
 0x19e   :  { %v343_v27 = vpop.f32.mrf.mxu1 }
 0x19f   :  { %v232_v28 = vsel %vm231_vm2, %v225_v26, 0.0 }
 0x1a0   :  { %233 = vadd.xlane.f32.xlu0 %v232_v28  ;;  %v227_v29 = vpop.f32.mrf.mxu1 }
 0x1a1   :  { %v228_v30 = vadd.f32 %v290_v24, %v227_v29 }
 0x1a2   :  { %v344_v31 = vpop.f32.mrf.mxu1 }
 0x1a3   :  { %v235_v32 = vsel %vm231_vm2, %v228_v30, 0.0 }
 0x1a4   :  { %236 = vadd.xlane.f32.xlu0 %v235_v32 }
 0x229   :  { %v234_v33 = vpop.xlane.xlu0 %233 }
 0x22a   :  { %v239_v34 = vmul.f32 0.03125, %v234_v33 }
 0x22c   :  { %v241_v35 = vsub.f32 %v225_v26, %v239_v34 }
 0x22d   :  { %v237_v36 = vpop.xlane.xlu0 %236 }
 0x22e   :  { %v240_v37 = vmul.f32 0.03125, %v237_v36  ;;  %v243_v38 = vmul.f32 %v241_v35, %v241_v35 }
 0x230   :  { %v242_v39 = vsub.f32 %v228_v30, %v240_v37  ;;  %v245_v40 = vsel %vm231_vm2, %v243_v38, 0.0 }
 0x231   :  { %246 = vadd.xlane.f32.xlu1 %v245_v40 }
 0x232   :  { %v244_v41 = vmul.f32 %v242_v39, %v242_v39 }
 0x234   :  { %v248_v42 = vsel %vm231_vm2, %v244_v41, 0.0 }
 0x235   :  { %249 = vadd.xlane.f32.xlu1 %v248_v42 }
 0x2ba   :  { %v247_v43 = vpop.xlane.xlu1 %246 }
 0x2bb   :  { %v251_v44 = vmul.f32 0.03125, %v247_v43 }
 0x2bd   :  { %v253_v45 = vadd.f32 1e-05, %v251_v44 }
 0x2be   :  { %v250_v46 = vpop.xlane.xlu1 %249 }
 0x2bf   :  { %363 = vrsqrt.f32 %v253_v45  ;;  %v252_v47 = vmul.f32 0.03125, %v250_v46 }
 0x2c1   :  { %v254_v48 = vadd.f32 1e-05, %v252_v47 }
 0x2c3   :  { %365 = vrsqrt.f32 %v254_v48 }
 0x2cc   :  { %v364_v49 = vpop.eup %363 }
 0x2cd   :  { %v257_v50 = vmul.f32 %v364_v49, %v241_v35 }
 0x2cf   :  { %v261_v52 = vmax.f32 %v257_v50, 0.0 }
 0x2d0   :  { %v366_v53 = vpop.eup %365 }
 0x2d1   :  { %v258_v54 = vmul.f32 %v366_v53, %v242_v39  ;;  %v263_v55 = vadd.f32 %v261_v52, %v259_v51 }
 0x2d3   :  { %v262_v57 = vmax.f32 %v258_v54, 0.0  ;;  %265 = vst.msk [vmem:[#allocation2] sm:$0xff] %vm231_vm2, %v263_v55 }
 0x2d5   :  { %v264_v58 = vadd.f32 %v262_v57, %v260_v56 }
 0x2d7   :  { %266 = vst.msk [vmem:[#allocation2 + $0x8] sm:$0xff] %vm231_vm2, %v264_v58 }
 0x2d8   :  { %378 = shalt.err (!%p375_p4)
}
 0x2d9   :  { %s392_s29 = smov 128   ;;  %s393_s30 = smov 8  }
 0x2da   :  { %278 = dma.vmem_to_hbm [thread:$0]  %s273_s25, 256, %s495_s6, [#allocation3], %s392_s29, %s392_s29, %s393_s30  }
 0x2db   :  { %387 = dma.done.wait [#allocation3], 256  }
 0x2dc   :  { %388 = vsyncadd [#allocation3], 4294967040 }
 0x2dd   :  { %282 = vsyncpa [#allocation3], 1 }

</bundles_post_ra>
